<compile_context>
chip_gen: v7x
topology: tpu7x:2x2x1
jax: 0.10.0
libtpu: 0.0.40
codegen_flags: <defaults>
</compile_context>

<pallas_src>
import functools

import jax
import jax.numpy as jnp
from jax.experimental import pallas as pl
from jax.experimental.pallas import tpu as pltpu

BN_EPS = 1e-5
LANE = 128  # lane-dense (padded) output width


def lnn2_kernel(x_ref, w2t_ref, w1e_ref, bias_ref, out_ref):
    """Fused: linear_2 -> BatchNorm1d (batch stats) -> folded-affine linear_1.

    x_ref    : (B, D_in)  native input dtype (cast to bf16 in-kernel)
    w2t_ref  : (D_in, W)  bf16
    w1e_ref  : (W, LANE)  bf16, gamma-folded, zero lane-pad
    bias_ref : (1, LANE)  f32,  beta @ W1^T, zero lane-pad
    out_ref  : (B, LANE)  f32
    """
    # In-kernel cast: MXU takes bf16 operands on v5e/v6e/v7x; accumulate f32.
    x = x_ref[...].astype(jnp.bfloat16)                                # (B, D_in)

    # linear_2 (no bias) on the MXU, f32 accumulation.
    h = jnp.dot(x, w2t_ref[...], preferred_element_type=jnp.float32)  # (B, W) f32

    # BatchNorm1d batch statistics, one-pass form, strictly f32
    # (biased variance, matching torch's normalization).
    inv_b = 1.0 / h.shape[0]                                           # static
    s = jnp.sum(h, axis=0, keepdims=True)                              # (1, W)
    ss = jnp.sum(h * h, axis=0, keepdims=True)                         # (1, W)
    mean = s * inv_b
    var = jnp.maximum(ss * inv_b - mean * mean, 0.0)                   # guard f32 cancellation
    d = h - mean                                                       # materialized once
    n = d * jax.lax.rsqrt(var + BN_EPS)                                # (B, W) f32

    # linear_1 with gamma folded into the (bf16) weight and beta folded into
    # the f32 bias. w1e is zero lane-padded to 128 columns -> unmasked vst.
    out_ref[...] = (
        jnp.dot(n.astype(jnp.bfloat16), w1e_ref[...],
                preferred_element_type=jnp.float32)
        + bias_ref[...]
    )


def prepare_params(w2, w1, gamma, beta):
    """One-time (outside the hot path) parameter preparation.

    w2: (width, D_in)  -> w2t:   (D_in, width) bf16
    w1: (n_out, width) -> w1e:   (width, LANE) bf16, gamma-scaled, zero lane-pad
    gamma/beta: (width,) -> bias: (1, LANE)    f32,  beta @ W1^T, zero lane-pad
    """
    n_out, width = w1.shape
    w2t = jnp.asarray(w2, jnp.float32).T                       # (D_in, width)
    w1t = jnp.asarray(w1, jnp.float32).T                       # (width, n_out)
    g = jnp.asarray(gamma, jnp.float32)
    b = jnp.asarray(beta, jnp.float32)

    w1_eff = g[:, None] * w1t                                  # (width, n_out)
    bias = b @ w1t                                             # (n_out,)

    pad = LANE - n_out
    w1_eff = jnp.pad(w1_eff, ((0, 0), (0, pad)))               # (width, LANE)
    bias = jnp.pad(bias, (0, pad)).reshape(1, LANE)            # (1, LANE) f32

    # Cast matmul operands to bf16 once, here (never per call).
    return w2t.astype(jnp.bfloat16), w1_eff.astype(jnp.bfloat16), bias, n_out


@jax.jit
def lnn2_forward_padded(x_nchw, w2t, w1_eff, bias):
    """Hot path: flatten + single fused pallas_call. Returns (B, LANE) padded
    logits; columns >= n_out are exactly 0 and must be masked downstream."""
    B = x_nchw.shape[0]
    d_in = w2t.shape[0]

    xf = x_nchw.reshape(B, d_in)   # nn.Flatten (contiguous, free); native dtype,
                                   # the cast to bf16 happens inside the kernel.
    return pl.pallas_call(
        lnn2_kernel,
        out_shape=jax.ShapeDtypeStruct((B, LANE), jnp.float32),
        in_specs=[pl.BlockSpec(memory_space=pltpu.MemorySpace.VMEM)] * 4,
        out_specs=pl.BlockSpec(memory_space=pltpu.MemorySpace.VMEM),
    )(xf, w2t, w1_eff, bias)


def lnn2_forward(x_nchw, w2t, w1_eff, bias, n_out):
    """Convenience wrapper for consumers that need the exact (B, n_out) shape.
    Prefer lnn2_forward_padded + downstream masking in the training loop."""
    return lnn2_forward_padded(x_nchw, w2t, w1_eff, bias)[:, :n_out]


def lnn2_reference(x_nchw, w2, w1, gamma, beta):
    """Pure-JAX f32 reference of the same forward pass."""
    B = x_nchw.shape[0]
    xf = x_nchw.reshape(B, -1).astype(jnp.float32)
    h = xf @ w2.T
    mean = h.mean(axis=0, keepdims=True)
    var = ((h - mean) ** 2).mean(axis=0, keepdims=True)
    hn = (h - mean) / jnp.sqrt(var + BN_EPS) * gamma[None, :] + beta[None, :]
    return hn @ w1.T


if __name__ == "__main__":
    # Small shapes consistent with the module: batch=8, C=3, H=W=8 -> input=192
    B, C, H, W = 8, 3, 8, 8
    input_size = C * H * W        # 192
    width = 32                    # args.width
    n_classes = 10

    key = jax.random.PRNGKey(0)
    kx, kw2, kw1, kg, kb = jax.random.split(key, 5)

    x = jax.random.normal(kx, (B, C, H, W), dtype=jnp.float32)
    # Deterministic synthetic parameters (shapes match the nn.Linear weights).
    w2 = jax.random.normal(kw2, (width, input_size), dtype=jnp.float32) * 0.05
    w1 = jax.random.normal(kw1, (n_classes, width), dtype=jnp.float32) * 0.1
    gamma = 1.0 + 0.1 * jax.random.normal(kg, (width,), dtype=jnp.float32)
    beta = 0.1 * jax.random.normal(kb, (width,), dtype=jnp.float32)

    # One-time parameter prep (outside the per-call hot path).
    w2t, w1_eff, bias, n_out = prepare_params(w2, w1, gamma, beta)
    w2t, w1_eff, bias = jax.block_until_ready((w2t, w1_eff, bias))

    out_pad = lnn2_forward_padded(x, w2t, w1_eff, bias)
    out_pad = jax.block_until_ready(out_pad)
    assert out_pad.shape == (B, LANE)

    # Pad columns must be exactly zero (so a downstream mask is well-defined).
    assert jnp.all(out_pad[:, n_out:] == 0.0), "pad columns not zero"

    out = out_pad[:, :n_out]                      # consumer-side slice
    ref = lnn2_reference(x, w2, w1, gamma, beta)  # f32 reference
    assert out.shape == (B, n_classes)
    # Tolerance reflects intentional bf16 MXU operands (f32 accumulation + f32 BN).
    assert jnp.allclose(out, ref, atol=3e-2, rtol=3e-2), "mismatch vs JAX reference"

    print("KERNEL_OK")
</pallas_src>

<mosaic_0001>
module attributes {stable_mosaic.version = 11 : i64} {
  func.func @lnn2_kernel(%arg0: memref<8x192xf32, #tpu.memory_space<vmem>>, %arg1: memref<192x32xbf16, #tpu.memory_space<vmem>>, %arg2: memref<32x128xbf16, #tpu.memory_space<vmem>>, %arg3: memref<1x128xf32, #tpu.memory_space<vmem>>, %arg4: memref<8x128xf32, #tpu.memory_space<vmem>>) attributes {dimension_semantics = [], scalar_prefetch = 0 : i64, scratch_operands = 0 : i64, tpu.core_type = #tpu.core_type<tc>} {
    %c0 = arith.constant 0 : index
    %c0_0 = arith.constant 0 : index
    %0 = vector.load %arg0[%c0, %c0_0] : memref<8x192xf32, #tpu.memory_space<vmem>>, vector<8x192xf32>
    %1 = arith.truncf %0 : vector<8x192xf32> to vector<8x192xbf16>
    %c0_1 = arith.constant 0 : index
    %c0_2 = arith.constant 0 : index
    %2 = vector.load %arg1[%c0_1, %c0_2] : memref<192x32xbf16, #tpu.memory_space<vmem>>, vector<192x32xbf16>
    %cst = arith.constant dense<0.000000e+00> : vector<8x32xf32>
    %3 = tpu.matmul %1, %2, %cst {dimension_numbers = #tpu.dot_dimension_numbers<[1], [0], [0], [1], [0, 0, 1, 1], [], []>} : vector<8x192xbf16>, vector<192x32xbf16>, vector<8x32xf32> -> vector<8x32xf32>
    %cst_3 = arith.constant dense<0.000000e+00> : vector<32xf32>
    %4 = vector.multi_reduction <add>, %3, %cst_3 [0] : vector<8x32xf32> to vector<32xf32>
    %5 = vector.shape_cast %4 : vector<32xf32> to vector<1x32xf32>
    %6 = arith.mulf %3, %3 : vector<8x32xf32>
    %cst_4 = arith.constant dense<0.000000e+00> : vector<32xf32>
    %7 = vector.multi_reduction <add>, %6, %cst_4 [0] : vector<8x32xf32> to vector<32xf32>
    %8 = vector.shape_cast %7 : vector<32xf32> to vector<1x32xf32>
    %cst_5 = arith.constant 1.250000e-01 : f32
    %9 = vector.broadcast %cst_5 : f32 to vector<1x32xf32>
    %10 = arith.mulf %5, %9 : vector<1x32xf32>
    %cst_6 = arith.constant 1.250000e-01 : f32
    %11 = vector.broadcast %cst_6 : f32 to vector<1x32xf32>
    %12 = arith.mulf %8, %11 : vector<1x32xf32>
    %13 = arith.mulf %10, %10 : vector<1x32xf32>
    %14 = arith.subf %12, %13 : vector<1x32xf32>
    %cst_7 = arith.constant 0.000000e+00 : f32
    %15 = vector.broadcast %cst_7 : f32 to vector<1x32xf32>
    %16 = arith.maximumf %14, %15 : vector<1x32xf32>
    %17 = vector.broadcast %10 : vector<1x32xf32> to vector<8x32xf32>
    %18 = arith.subf %3, %17 : vector<8x32xf32>
    %cst_8 = arith.constant 9.99999974E-6 : f32
    %19 = vector.broadcast %cst_8 : f32 to vector<1x32xf32>
    %20 = arith.addf %16, %19 : vector<1x32xf32>
    %21 = math.rsqrt %20 : vector<1x32xf32>
    %22 = vector.broadcast %21 : vector<1x32xf32> to vector<8x32xf32>
    %23 = arith.mulf %18, %22 : vector<8x32xf32>
    %24 = arith.truncf %23 : vector<8x32xf32> to vector<8x32xbf16>
    %c0_9 = arith.constant 0 : index
    %c0_10 = arith.constant 0 : index
    %25 = vector.load %arg2[%c0_9, %c0_10] : memref<32x128xbf16, #tpu.memory_space<vmem>>, vector<32x128xbf16>
    %cst_11 = arith.constant dense<0.000000e+00> : vector<8x128xf32>
    %26 = tpu.matmul %24, %25, %cst_11 {dimension_numbers = #tpu.dot_dimension_numbers<[1], [0], [0], [1], [0, 0, 1, 1], [], []>} : vector<8x32xbf16>, vector<32x128xbf16>, vector<8x128xf32> -> vector<8x128xf32>
    %c0_12 = arith.constant 0 : index
    %c0_13 = arith.constant 0 : index
    %27 = vector.load %arg3[%c0_12, %c0_13] : memref<1x128xf32, #tpu.memory_space<vmem>>, vector<1x128xf32>
    %28 = vector.broadcast %27 : vector<1x128xf32> to vector<8x128xf32>
    %29 = arith.addf %26, %28 : vector<8x128xf32>
    %c0_14 = arith.constant 0 : index
    %c0_15 = arith.constant 0 : index
    %30 = vector.load %arg4[%c0_14, %c0_15] : memref<8x128xf32, #tpu.memory_space<vmem>>, vector<8x128xf32>
    tpu.vector_store %arg4[%c0_14, %c0_15], %29 {strides = array<i32>} : memref<8x128xf32, #tpu.memory_space<vmem>>, vector<8x128xf32>,
    return
  }
}

</mosaic_0001>

<bundles_post_ra>
// kernel: lnn2_forward_padded.1
= control target key start
LH: loop header
LB: loop body
LE: loop exit
PB: predicated region body
PF: predicated region fallthrough
CT: control target
= control target key end

     0   :  { %v342_v1 = vmov 0   ;;  %vm119_vm0 = vcmask 523264   ;;  %s437_s0 = inlined_call_operand.vmem [shape: f32[8,192], index: 0, kind: input, shape index: {}]   ;;  %s438_s1 = inlined_call_operand.vmem [shape: bf16[192,32], index: 1, kind: input, shape index: {}]   ;;  %s439_s2 = inlined_call_operand.vmem [shape: bf16[32,128], index: 2, kind: input, shape index: {}]   ;;  %s440_s3 = inlined_call_operand.vmem [shape: f32[1,128], index: 3, kind: input, shape index: {}]   ;;  %s441_s4 = inlined_call_operand.hbm [shape: f32[8,128], index: 4, kind: output, shape index: {}]  }
   0x1   :  { %v302_v0 = vld [vmem:[%s438_s1] sm:$0xff]   ;;  %123 = vmatprep.subr.bf16.mxu0 %v342_v1  ;;  %v303_v2 = vld [vmem:[%s438_s1 + $0x8] sm:$0xff]   ;;  %v304_v3 = vld [vmem:[%s438_s1 + $0x10] sm:$0xff]  }
   0x2   :  { %124 = vmatpush1.bf16.msra.mxu0 %v302_v0  ;;  %v305_v4 = vld [vmem:[%s438_s1 + $0x18] sm:$0xff]   ;;  %v20_v5 = vld [vmem:[%s437_s0 + $0x8] sm:$0xff]  ;;  %v306_v7 = vld [vmem:[%s438_s1 + $0x20] sm:$0xff]  }
   0x3   :  { %125 = vmatprep.subr.bf16.mxu0 %v342_v1  ;;  %v22_v6 = vpack.c.bf16 %v20_v5, %v20_v5 }
   0x6   :  { %126 = vmatpush1.bf16.msra.mxu0 %v303_v2 }
   0x7   :  { %127 = vmatprep.subr.bf16.mxu0 %v342_v1 }
   0xa   :  { %128 = vmatpush1.bf16.msra.mxu0 %v304_v3 }
   0xb   :  { %129 = vmatprep.subr.bf16.mxu0 %v342_v1 }
   0xe   :  { %130 = vmatpush1.bf16.msra.mxu0 %v305_v4 }
   0xf   :  { %9 = vsyncpa [#allocation3], 0  ;;  %131 = vmatprep.subr.bf16.mxu0 %v342_v1  ;;  %282 = vmatprep.mubr.msk.bf16.mxu0 %vm119_vm0, %v22_v6  ;;  %v307_v8 = vld [vmem:[%s438_s1 + $0x28] sm:$0xff]   ;;  %v308_v9 = vld [vmem:[%s438_s1 + $0x30] sm:$0xff]   ;;  %v343_v18 = vmov 0.0   ;;  %vm344_vm1 = vmmov 0  }
  0x10   :  { %v309_v10 = vld [vmem:[%s438_s1 + $0x38] sm:$0xff]   ;;  %v310_v11 = vld [vmem:[%s438_s1 + $0x40] sm:$0xff]   ;;  %v311_v12 = vld [vmem:[%s438_s1 + $0x48] sm:$0xff]   ;;  %290 = vmatprep.subr.bf16.mxu1 %v343_v18  ;;  %294 = vmatprep.mubr.msk.bf16.mxu1 %vm344_vm1, %v343_v18  ;;  %vm163_vm2 = vcmask 261120  }
  0x11   :  { %v312_v13 = vld [vmem:[%s438_s1 + $0x50] sm:$0xff]   ;;  %v313_v14 = vld [vmem:[%s438_s1 + $0x58] sm:$0xff]   ;;  %v19_v15 = vld [vmem:[%s437_s0] sm:$0xff] }
  0x12   :  { %132 = vmatpush1.bf16.msra.mxu0 %v306_v7  ;;  %v21_v16 = vpack.c.bf16 %v19_v15, %v19_v15  ;;  %v314_v17 = vld [vmem:[%s439_s2] sm:$0xff]   ;;  %v315_v19 = vld [vmem:[%s439_s2 + $0x8] sm:$0xff]   ;;  %s345_s2 = smov [#allocation2]  }
  0x13   :  { %133 = vmatprep.subr.bf16.mxu0 %v342_v1  ;;  %291 = vmatpush3.bf16.msra.mxu1 %v314_v17  ;;  %v283_v49 = vld [vmem:[%s440_s3] ss:$0 sm:$0xff]  ;;  %s262_s21 = sshll.u32 %s345_s2, 4  ;;  %s263_s21 = int_to_ptr.vmem [resolvable:$true] %s262_s21 }
  0x14   :  { %292 = vmatprep.subr.bf16.mxu1 %v343_v18  ;;  %s318_s22 = scalar_lea.vmem %s263_s21, 128  ;;  %p323_p1 = scmp.lt.s32.totalorder %s263_s21, %s263_s21 }
  0x15   :  { %p319_p0 = scmp.ne.s32.totalorder %s263_s21, %s318_s22  ;;  %p324_p2 = scmp.lt.s32.totalorder %s318_s22, %s318_s22 }
  0x16   :  { %134 = vmatpush1.bf16.msra.mxu0 %v307_v8 }
  0x17   :  { %135 = vmatprep.subr.bf16.mxu0 %v342_v1  ;;  %293 = vmatpush3.bf16.msra.mxu1 %v315_v19  ;;  %p325_p3 = por %p324_p2, %p323_p1 }
  0x19   :  { %p326_p4 = pnand %p325_p3, %p319_p0 }
  0x1a   :  { %136 = vmatpush1.bf16.msra.mxu0 %v308_v9 }
  0x1b   :  { %137 = vmatprep.subr.bf16.mxu0 %v342_v1 }
  0x1e   :  { %138 = vmatpush1.bf16.msra.mxu0 %v309_v10 }
  0x1f   :  { %139 = vmatprep.subr.bf16.mxu0 %v342_v1 }
  0x22   :  { %140 = vmatpush1.bf16.msra.mxu0 %v310_v11 }
  0x23   :  { %141 = vmatprep.subr.bf16.mxu0 %v342_v1 }
  0x26   :  { %142 = vmatpush1.bf16.msra.mxu0 %v311_v12 }
  0x27   :  { %143 = vmatprep.subr.bf16.mxu0 %v342_v1 }
  0x2a   :  { %144 = vmatpush1.bf16.msra.mxu0 %v312_v13 }
  0x2b   :  { %145 = vmatprep.subr.bf16.mxu0 %v342_v1 }
  0x2e   :  { %146 = vmatpush1.bf16.msra.mxu0 %v313_v14 }
  0x31   :  { %156 = vmatmul.mubr.bf16.vlgmr.msra.gmra.mrb[0].mxu0 %v21_v16 }
 0x104   :  { %v157_v20 = vpop.f32.mrb[0].mxu0 }
 0x105   :  { %v164_v21 = vsel %vm163_vm2, %v157_v20, 0.0  ;;  %v171_v22 = vmul.f32 %v157_v20, %v157_v20  ;;  %v159_v23 = vpop.f32.mrb[1].mxu0 }
 0x106   :  { %v165_v24 = vrot.slane %v164_v21, 4  ;;  %v160_v25 = vpop.f32.mrb[2].mxu0 }
 0x107   :  { %v172_v26 = vsel %vm163_vm2, %v171_v22, 0.0  ;;  %v161_v27 = vpop.f32.mrb[3].mxu0 }
 0x108   :  { %v166_v28 = vadd.f32 %v165_v24, %v164_v21  ;;  %v173_v29 = vrot.slane %v172_v26, 4 }
 0x10a   :  { %v167_v30 = vrot.slane %v166_v28, 2  ;;  %v174_v31 = vadd.f32 %v173_v29, %v172_v26 }
 0x10c   :  { %v168_v32 = vadd.f32 %v167_v30, %v166_v28  ;;  %v175_v33 = vrot.slane %v174_v31, 2 }
 0x10e   :  { %v169_v34 = vrot.slane %v168_v32, 1  ;;  %v176_v35 = vadd.f32 %v175_v33, %v174_v31 }
 0x110   :  { %v170_v36 = vadd.f32 %v169_v34, %v168_v32  ;;  %v177_v37 = vrot.slane %v176_v35, 1 }
 0x112   :  { %v178_v38 = vadd.f32 %v177_v37, %v176_v35  ;;  %v179_v39 = vmul.f32 0.125, %v170_v36 }
 0x114   :  { %v180_v40 = vmul.f32 0.125, %v178_v38  ;;  %v181_v41 = vmul.f32 %v179_v39, %v179_v39  ;;  %v184_v45 = vsub.f32 %v157_v20, %v179_v39 }
 0x116   :  { %v182_v42 = vsub.f32 %v180_v40, %v181_v41 }
 0x118   :  { %v183_v43 = vmax.f32 %v182_v42, 0.0 }
 0x11a   :  { %v185_v44 = vadd.f32 1e-05, %v183_v43 }
 0x11c   :  { %316 = vrsqrt.f32 %v185_v44 }
 0x126   :  { %v317_v46 = vpop.eup %316 }
 0x127   :  { %v187_v47 = vmul.f32 %v317_v46, %v184_v45 }
 0x129   :  { %v188_v48 = vpack.c.bf16 %v187_v47, %v187_v47 }
 0x12b   :  { %295 = vmatmul.mubr.msk.bf16.vlgmr.msra.gmra.mrb[0].mxu1 %vm163_vm2, %v188_v48 }
 0x1fe   :  { %v249_v50 = vpop.f32.mrb[0].mxu1 }
 0x1ff   :  { %v250_v51 = vadd.f32 %v283_v49, %v249_v50  ;;  %v296_v52 = vpop.f32.mrb[1].mxu1 }
 0x200   :  { %v252_v53 = vpop.f32.mrb[2].mxu1 }
 0x201   :  { %255 = vst [vmem:[#allocation2] sm:$0xff] %v250_v51  ;;  %v297_v54 = vpop.f32.mrb[3].mxu1 }
 0x202   :  { %329 = shalt.err (!%p326_p4)
}
 0x203   :  { %s330_s3 = scalar_lea.hbm %s441_s4, 128 }
 0x204   :  { %p331_p5 = scmp.ne.s32.totalorder %s441_s4, %s330_s3  ;;  %p334_p6 = scmp.lt.u32.totalorder %s330_s3, %s441_s4 }
 0x206   :  { %p336_p7 = pnand %p334_p6, %p331_p5 }
 0x208   :  { %339 = shalt.err (!%p336_p7)
}
 0x209   :  { %265 = dma.vmem_to_hbm [thread:$0]  %s263_s21, 128, %s441_s4, [#allocation3]  }
 0x20a   :  { %340 = dma.done.wait [#allocation3], 128  }
 0x20b   :  { %341 = vsyncadd [#allocation3], 4294967168 }
 0x20c   :  { %269 = vsyncpa [#allocation3], 1 }

</bundles_post_ra>
